<compile_context>
chip_gen: v5e
topology: v5e:2x2
jax: 0.10.0
libtpu: 0.0.40
codegen_flags: <defaults>
</compile_context>

<pallas_src>
import math

import jax
import jax.numpy as jnp
from jax.experimental import pallas as pl
from jax.experimental.pallas import tpu as pltpu


_LANE = 128
_SUBLANE = 8
_VMEM_TILE_BUDGET = 40 * 2**20          # keep double-buffered tiles under v7x's 64 MiB
_VMEM_LIMIT_CAP = 56 * 2**20


def _round_up(x, m):
    return ((x + m - 1) // m) * m


def _vmem_tile_bytes(tile_n, dim, num_codebooks, x_itemsize, out_itemsize, w_bytes):
    """Lane-padded, double-buffered VMEM footprint of the streamed blocks."""
    x_b = tile_n * _round_up(dim, _LANE) * x_itemsize
    o_b = tile_n * _round_up(dim + num_codebooks, _LANE) * out_itemsize
    return 2 * (x_b + o_b) + 2 * w_bytes


def _lfq_kernel(x_ref, w_in_ref, b_in_ref, w_fused_ref, b_fused_ref, out_ref):
    # project_in: (tile_n, dim) @ (dim, codebook_dims) + bias  (f32 accumulate).
    # Operand dtype follows w_in (compute_dtype chosen in the wrapper).
    x = x_ref[...].astype(w_in_ref.dtype)
    h = jnp.dot(x, w_in_ref[...],
                preferred_element_type=jnp.float32) + b_in_ref[...]

    # binary quantization (strict > 0, matching torch, bias included)
    x_pos = (h > 0.0).astype(jnp.float32)

    # single fused matmul: first `dim` columns are project_out(q), trailing
    # `num_codebooks` columns are the per-codebook integer codes.
    fused = jnp.dot(x_pos, w_fused_ref[...],
                    preferred_element_type=jnp.float32) + b_fused_ref[...]

    out_ref[...] = fused.astype(out_ref.dtype)


def lfq_forward(x, w_in, b_in, w_out, b_out, *, codebook_dim, num_codebooks,
                codebook_scale=1.0, tile_n=8192, out_dtype=None,
                compute_dtype=jnp.float32):
    """x: (..., dim). Returns (out (..., dim), indices (..., num_codebooks), commit_loss).

    compute_dtype: operand dtype of the project_in matmul (bf16 recommended on
      v6e/v7x; keep f32 on v5e or when exact sign(h) matters near 0).
    out_dtype: storage dtype of project_out(q); bf16 halves the writeback.
    """
    orig_shape = x.shape
    dim = orig_shape[-1]
    codebook_dims = codebook_dim * num_codebooks
    out_dtype = x.dtype if out_dtype is None else jnp.dtype(out_dtype)

    # float index trick must stay exact: f32 accumulation + storage in out_dtype.
    assert codebook_dim <= 24, "codebook_dim too large for exact f32 index matmul"
    assert codebook_dim <= jnp.finfo(out_dtype).nmant + 1, (
        "codes don't fit exactly in out_dtype; use a wider out_dtype")

    xf = x.reshape(-1, dim)
    n_rows = xf.shape[0]

    # weights in (in, out) layout for the kernel
    w_in_t = w_in.T.astype(compute_dtype)            # (dim, codebook_dims)
    w_out_t = w_out.T.astype(jnp.float32)            # (codebook_dims, dim)
    b_in_2d = b_in.astype(jnp.float32).reshape(1, codebook_dims)

    # block-diagonal power-of-two matrix for index computation
    mask = (2.0 ** jnp.arange(codebook_dim - 1, -1, -1,
                              dtype=jnp.float32))                 # (codebook_dim,)
    w_idx = jnp.zeros((codebook_dims, num_codebooks), jnp.float32)
    for c in range(num_codebooks):
        w_idx = w_idx.at[c * codebook_dim:(c + 1) * codebook_dim, c].set(mask)

    # fused RHS / bias:  out = x_pos @ (2*scale*W_out^T) + (b_out - scale*sum(W_out^T, 0))
    #                    idx = x_pos @ W_idx
    w_fused = jnp.concatenate(
        [2.0 * codebook_scale * w_out_t, w_idx], axis=1)          # (cbd, dim + nc)
    b_fused = jnp.concatenate(
        [b_out.astype(jnp.float32) - codebook_scale * jnp.sum(w_out_t, axis=0),
         jnp.zeros((num_codebooks,), jnp.float32)]).reshape(1, dim + num_codebooks)

    # ---- tile selection: big tiles (amortize ~0.35 us/step), VMEM-budgeted,
    # ---- no wrapper-side padding (Pallas masks the ragged last block).
    w_bytes = (w_in_t.size * w_in_t.dtype.itemsize
               + b_in_2d.size * 4 + w_fused.size * 4 + b_fused.size * 4)
    x_isz = xf.dtype.itemsize
    o_isz = out_dtype.itemsize

    tile_n_eff = min(tile_n, _round_up(n_rows, _SUBLANE))
    tile_n_eff = max(_SUBLANE, (tile_n_eff // _SUBLANE) * _SUBLANE)
    while (tile_n_eff > _SUBLANE and
           _vmem_tile_bytes(tile_n_eff, dim, num_codebooks, x_isz, o_isz,
                            w_bytes) > _VMEM_TILE_BUDGET):
        tile_n_eff = max(_SUBLANE, _round_up(tile_n_eff // 2, _SUBLANE))
    # guarantee >= 2 grid steps when possible so both v7x TensorCores get work
    if n_rows > _SUBLANE and pl.cdiv(n_rows, tile_n_eff) < 2:
        tile_n_eff = max(_SUBLANE, _round_up(pl.cdiv(n_rows, 2), _SUBLANE))

    grid = (pl.cdiv(n_rows, tile_n_eff),)
    vmem_est = _vmem_tile_bytes(tile_n_eff, dim, num_codebooks, x_isz, o_isz,
                                w_bytes)
    vmem_limit = int(min(max(2 * vmem_est, 32 * 2**20), _VMEM_LIMIT_CAP))

    n_out_cols = dim + num_codebooks
    cost = pl.CostEstimate(
        flops=2 * n_rows * codebook_dims * (dim + n_out_cols),
        transcendentals=0,
        bytes_accessed=(n_rows * dim * x_isz + n_rows * n_out_cols * o_isz
                        + grid[0] * w_bytes),
    )

    merged = pl.pallas_call(
        _lfq_kernel,
        out_shape=jax.ShapeDtypeStruct((n_rows, n_out_cols), out_dtype),
        grid_spec=pltpu.PrefetchScalarGridSpec(
            num_scalar_prefetch=0,
            grid=grid,
            in_specs=[
                pl.BlockSpec((tile_n_eff, dim), lambda i: (i, 0)),         # x
                pl.BlockSpec((dim, codebook_dims), lambda i: (0, 0)),      # w_in^T
                pl.BlockSpec((1, codebook_dims), lambda i: (0, 0)),        # b_in
                pl.BlockSpec((codebook_dims, n_out_cols),
                             lambda i: (0, 0)),                            # w_fused
                pl.BlockSpec((1, n_out_cols), lambda i: (0, 0)),           # b_fused
            ],
            out_specs=pl.BlockSpec((tile_n_eff, n_out_cols), lambda i: (i, 0)),
        ),
        compiler_params=pltpu.CompilerParams(
            dimension_semantics=("parallel",),
            vmem_limit_bytes=vmem_limit),
        cost_estimate=cost,
    )(xf, w_in_t, b_in_2d, w_fused, b_fused)

    out = merged[:, :dim].reshape(orig_shape)
    # index values are small non-negative integers, exact in out_dtype (guarded)
    idx = merged[:, dim:].astype(jnp.int32).reshape(
        orig_shape[:-1] + (num_codebooks,))
    # TODO(synk): entropy/commitment losses are training-only; forward returns the zero buffer.
    commit_loss = jnp.float32(0.0)
    return out, idx, commit_loss


def _reference(x, w_in, b_in, w_out, b_out, codebook_dim, num_codebooks,
               codebook_scale):
    h = x @ w_in.T + b_in
    h = h.reshape(h.shape[:-1] + (num_codebooks, codebook_dim))
    x_pos = h > 0.0
    q = jnp.where(x_pos, codebook_scale, -codebook_scale).astype(jnp.float32)
    mask = 2 ** jnp.arange(codebook_dim - 1, -1, -1, dtype=jnp.int32)
    idx = jnp.sum(x_pos.astype(jnp.int32) * mask, axis=-1)
    out = q.reshape(q.shape[:-2] + (num_codebooks * codebook_dim,)) @ w_out.T + b_out
    return out, idx


if __name__ == "__main__":
    # Module config: dim=32, codebook_size=16 -> codebook_dim=4, num_codebooks=2
    dim = 32
    codebook_size = 16
    codebook_dim = round(math.log2(codebook_size))   # 4
    num_codebooks = 2
    codebook_dims = codebook_dim * num_codebooks     # 8
    codebook_scale = 1.0

    key = jax.random.PRNGKey(0)
    k_x, k_wi, k_bi, k_wo, k_bo = jax.random.split(key, 5)

    batch, seq = 2, 8
    x = jax.random.normal(k_x, (batch, seq, dim), dtype=jnp.float32)

    # deterministic Linear params (uniform, ~1/sqrt(fan_in) like torch default)
    lim_in = 1.0 / math.sqrt(dim)
    w_in = jax.random.uniform(k_wi, (codebook_dims, dim), jnp.float32,
                              -lim_in, lim_in)
    b_in = jax.random.uniform(k_bi, (codebook_dims,), jnp.float32,
                              -lim_in, lim_in)
    lim_out = 1.0 / math.sqrt(codebook_dims)
    w_out = jax.random.uniform(k_wo, (dim, codebook_dims), jnp.float32,
                               -lim_out, lim_out)
    b_out = jax.random.uniform(k_bo, (dim,), jnp.float32, -lim_out, lim_out)

    out, idx, commit_loss = lfq_forward(
        x, w_in, b_in, w_out, b_out,
        codebook_dim=codebook_dim, num_codebooks=num_codebooks,
        codebook_scale=codebook_scale)
    jax.block_until_ready((out, idx, commit_loss))

    ref_out, ref_idx = _reference(x, w_in, b_in, w_out, b_out,
                                  codebook_dim, num_codebooks, codebook_scale)
    assert out.shape == (batch, seq, dim)
    assert idx.shape == (batch, seq, num_codebooks)
    assert jnp.allclose(out, ref_out, atol=1e-5, rtol=1e-5)
    assert jnp.array_equal(idx, ref_idx)
    assert float(commit_loss) == 0.0

    print("KERNEL_OK")
</pallas_src>

<mosaic_0001>
module attributes {stable_mosaic.version = 11 : i64} {
  func.func @_lfq_kernel(%arg0: i32, %arg1: memref<8x32xf32, #tpu.memory_space<vmem>>, %arg2: memref<32x8xf32, #tpu.memory_space<vmem>>, %arg3: memref<1x8xf32, #tpu.memory_space<vmem>>, %arg4: memref<8x34xf32, #tpu.memory_space<vmem>>, %arg5: memref<1x34xf32, #tpu.memory_space<vmem>>, %arg6: memref<8x34xf32, #tpu.memory_space<vmem>>) attributes {dimension_semantics = [#tpu.dimension_semantics<parallel>], iteration_bounds = array<i64: 2>, scalar_prefetch = 0 : i64, scratch_operands = 0 : i64, tpu.core_type = #tpu.core_type<tc>, window_params = [{transform_indices = @transform_0, window_bounds = array<i64: 8, 32>}, {pipeline_mode = #tpu.pipeline_mode<synchronous>, transform_indices = @transform_1, window_bounds = array<i64: 32, 8>}, {pipeline_mode = #tpu.pipeline_mode<synchronous>, transform_indices = @transform_2, window_bounds = array<i64: 1, 8>}, {pipeline_mode = #tpu.pipeline_mode<synchronous>, transform_indices = @transform_3, window_bounds = array<i64: 8, 34>}, {pipeline_mode = #tpu.pipeline_mode<synchronous>, transform_indices = @transform_4, window_bounds = array<i64: 1, 34>}, {transform_indices = @transform_5, window_bounds = array<i64: 8, 34>}]} {
    %c0 = arith.constant 0 : index
    %c0_0 = arith.constant 0 : index
    %0 = vector.load %arg1[%c0, %c0_0] : memref<8x32xf32, #tpu.memory_space<vmem>>, vector<8x32xf32>
    %c0_1 = arith.constant 0 : index
    %c0_2 = arith.constant 0 : index
    %1 = vector.load %arg2[%c0_1, %c0_2] : memref<32x8xf32, #tpu.memory_space<vmem>>, vector<32x8xf32>
    %cst = arith.constant dense<0.000000e+00> : vector<8x8xf32>
    %2 = tpu.matmul %0, %1, %cst {dimension_numbers = #tpu.dot_dimension_numbers<[1], [0], [0], [1], [0, 0, 1, 1], [], []>} : vector<8x32xf32>, vector<32x8xf32>, vector<8x8xf32> -> vector<8x8xf32>
    %c0_3 = arith.constant 0 : index
    %c0_4 = arith.constant 0 : index
    %3 = vector.load %arg3[%c0_3, %c0_4] : memref<1x8xf32, #tpu.memory_space<vmem>>, vector<1x8xf32>
    %4 = vector.broadcast %3 : vector<1x8xf32> to vector<8x8xf32>
    %5 = arith.addf %2, %4 : vector<8x8xf32>
    %cst_5 = arith.constant 0.000000e+00 : f32
    %6 = vector.broadcast %cst_5 : f32 to vector<8x8xf32>
    %7 = arith.cmpf ogt, %5, %6 : vector<8x8xf32>
    %8 = arith.extui %7 : vector<8x8xi1> to vector<8x8xi32>
    %9 = arith.sitofp %8 : vector<8x8xi32> to vector<8x8xf32>
    %c0_6 = arith.constant 0 : index
    %c0_7 = arith.constant 0 : index
    %10 = vector.load %arg4[%c0_6, %c0_7] : memref<8x34xf32, #tpu.memory_space<vmem>>, vector<8x34xf32>
    %cst_8 = arith.constant dense<0.000000e+00> : vector<8x34xf32>
    %11 = tpu.matmul %9, %10, %cst_8 {dimension_numbers = #tpu.dot_dimension_numbers<[1], [0], [0], [1], [0, 0, 1, 1], [], []>} : vector<8x8xf32>, vector<8x34xf32>, vector<8x34xf32> -> vector<8x34xf32>
    %c0_9 = arith.constant 0 : index
    %c0_10 = arith.constant 0 : index
    %12 = vector.load %arg5[%c0_9, %c0_10] : memref<1x34xf32, #tpu.memory_space<vmem>>, vector<1x34xf32>
    %13 = vector.broadcast %12 : vector<1x34xf32> to vector<8x34xf32>
    %14 = arith.addf %11, %13 : vector<8x34xf32>
    %c0_11 = arith.constant 0 : index
    %c0_12 = arith.constant 0 : index
    %15 = vector.load %arg6[%c0_11, %c0_12] : memref<8x34xf32, #tpu.memory_space<vmem>>, vector<8x34xf32>
    tpu.vector_store %arg6[%c0_11, %c0_12], %14 {strides = array<i32>} : memref<8x34xf32, #tpu.memory_space<vmem>>, vector<8x34xf32>,
    return
  }
  func.func @transform_0(%arg0: i32) -> (i32, i32) {
    %c0_i32 = arith.constant 0 : i32
    %c0_i32_0 = arith.constant 0 : i32
    return %arg0, %c0_i32 : i32, i32
  }
  func.func @transform_1(%arg0: i32) -> (i32, i32) {
    %c0_i32 = arith.constant 0 : i32
    %c0_i32_0 = arith.constant 0 : i32
    %c0_i32_1 = arith.constant 0 : i32
    return %c0_i32, %c0_i32_0 : i32, i32
  }
  func.func @transform_2(%arg0: i32) -> (i32, i32) {
    %c0_i32 = arith.constant 0 : i32
    %c0_i32_0 = arith.constant 0 : i32
    %c0_i32_1 = arith.constant 0 : i32
    return %c0_i32, %c0_i32_0 : i32, i32
  }
  func.func @transform_3(%arg0: i32) -> (i32, i32) {
    %c0_i32 = arith.constant 0 : i32
    %c0_i32_0 = arith.constant 0 : i32
    %c0_i32_1 = arith.constant 0 : i32
    return %c0_i32, %c0_i32_0 : i32, i32
  }
  func.func @transform_4(%arg0: i32) -> (i32, i32) {
    %c0_i32 = arith.constant 0 : i32
    %c0_i32_0 = arith.constant 0 : i32
    %c0_i32_1 = arith.constant 0 : i32
    return %c0_i32, %c0_i32_0 : i32, i32
  }
  func.func @transform_5(%arg0: i32) -> (i32, i32) {
    %c0_i32 = arith.constant 0 : i32
    %c0_i32_0 = arith.constant 0 : i32
    return %arg0, %c0_i32 : i32, i32
  }
}

</mosaic_0001>

<bundles_post_ra>
// kernel: tpu_custom_call.1
= control target key start
LH: loop header
LB: loop body
LE: loop exit
PB: predicated region body
PF: predicated region fallthrough
CT: control target
= control target key end

     0   :  { %10 = vsyncpa [#allocation3], 0  ;;  %s618_s0 = inlined_call_operand.vmem [shape: f32[16,32], index: 0, kind: input, shape index: {}]   ;;  %s619_s1 = inlined_call_operand.vmem [shape: f32[32,8], index: 1, kind: input, shape index: {}]   ;;  %s620_s2 = inlined_call_operand.vmem [shape: f32[1,8], index: 2, kind: input, shape index: {}]   ;;  %s621_s3 = inlined_call_operand.vmem [shape: f32[8,34], index: 3, kind: input, shape index: {}]   ;;  %s622_s4 = inlined_call_operand.vmem [shape: f32[1,34], index: 4, kind: input, shape index: {}]   ;;  %s623_s5 = inlined_call_operand.hbm [shape: f32[16,34], index: 5, kind: output, shape index: {}]  }
   0x1   :  { %12 = vsyncpa [#allocation3 + $0x1], 0  ;;  %s512_s18 = smov 0   ;;  %s514_s19 = smov 0  }
   0x2   :  { %s516_s20 = smov 0   ;;  %s518_s21 = smov 0  }
   0x3 LB: > { %s533_s22 = sadd.s32 4294967295, %s479_s21   ;;  %s362_s23 = sadd.s32 4294967294, %s479_s21   ;;  %s479_s21 = sphi %s518_s21, %s629_s21   ;;  %s475_s20 = sphi %s516_s20, %s628_s20   ;;  %s471_s19 = sphi %s514_s19, %s627_s19   ;;  %s467_s18 = sphi %s512_s18, %s626_s18  }
   0x4   : > { %s537_s24 = sadd.s32 1, %s479_s21   ;;  %s135_s25 = sadd.s32 1, %s475_s20 }
   0x5   : > { %s132_s26 = ssub.s32 %s479_s21, %s537_s24  ;;  %p145_p0 = scmp.ne.s32.totalorder %s475_s20, %s471_s19 }
   0x6   : > { %p133_p1 = scmp.eq.s32.totalorder %s132_s26, 0  ;;  %p146_p2 = scmp.eq.s32.totalorder %s533_s22, 1 }
   0x7   : > { %p151_p3 = scmp.ne.s32.totalorder %s471_s19, %s467_s18  ;;  %p152_p4 = scmp.eq.s32.totalorder %s362_s23, 1 }
   0x8   : > { %s548_s27 = scalar_select %p133_p1, %s475_s20, %s135_s25  }
   0x9   : > { %p550_p5 = por %p146_p2, %p145_p0  ;;  %p554_p6 = por %p152_p4, %p151_p3 }
   0xa   : > { %p365_p7 = scmp.ge.s32.totalorder %s479_s21, 1  ;;  %p189_p8 = scmp.lt.s32.totalorder %s479_s21, 3 }
   0xc   : > { %p190_p9 = pnand %p365_p7, %p189_p8 }
   0xd   : > { %p216_p10 = scmp.lt.s32.totalorder (!%p190_p9), %s533_s22, 1  ;;  %s213_s6 = sand.u32 (!%p190_p9), 1, %s471_s19  }
   0xe   : > { %193 = sbr.rel (%p190_p9) target bundleno = 288 (0x120), region = 40  ;;  %s366_s7 = sshll.u32 (!%p190_p9), %s213_s6, 3 }
   0xf   : > { %s372_s8 = sshll.u32 (!%p190_p9), %s533_s22, 3  ;;  %s437_s30 = scalar_lea.hbm (!%p190_p9), %s623_s5, 16 }
  0x13   : > { %v224_v0 = vld [vmem:[%s619_s1 + $0x18] sm:$0xff]  ;;  %v223_v1 = vld [vmem:[%s619_s1 + $0x10] sm:$0xff]  ;;  %v222_v2 = vld [vmem:[%s619_s1 + $0x8] sm:$0xff]  ;;  %s217_s11 = scalar_select %p216_p10, %s533_s22, 1  ;;  %vm229_vm0 = vcmask 261120   ;;  %vm261_vm1 = vcmask 64512  }
  0x14   : > { %245 = vmatpush.msra.mxu0 %v224_v0  ;;  %v221_v3 = vld [vmem:[%s619_s1] sm:$0xff]  ;;  %v481_v9 = vmov 0.0   ;;  %vm285_vm3 = vcmask 277504  }
  0x15   : > { %s367_s14 = sshll.u32 %s217_s11, 3  ;;  %v256_v5 = vld [vmem:[%s621_s3] sm:$0xff]  ;;  %s298_s11 = scalar_lea.hbm %s623_s5, %s372_s8 }
  0x16   : > { %246 = vmatpush.msra.mxu0 %v223_v1  ;;  %s219_s17 = scalar_lea.vmem %s618_s0, %s367_s14  ;;  %280 = vmatpush.msra.mxu1 %v256_v5  ;;  %v415_v6 = vld [vmem:[%s620_s2] ss:$0 sm:$0xff]  ;;  %s215_s14 = scalar_lea.vmem [#allocation2], %s366_s7 }
  0x17   : > { %v220_v4 = vld [vmem:[%s219_s17] sm:$0xff]  ;;  %s300_s15 = sshll.u32 %s215_s14, 4  ;;  %s302_s16 = sshll.u32 %s298_s11, 4  ;;  %s301_s15 = int_to_ptr.vmem [resolvable:$true] %s300_s15  ;;  %s303_s16 = int_to_ptr.hbm [resolvable:$true] %s302_s16 }
  0x18   : > { %247 = vmatpush.msra.mxu0 %v222_v2  ;;  %v416_v11 = vld [vmem:[%s622_s4] ss:$0 sm:$0xff]  ;;  %s288_s17 = scalar_lea.sflag [#allocation3], %s213_s6  ;;  %s431_s22 = sshra.s32 %s303_s16, 4  ;;  %s432_s22 = int_to_ptr.hbm [resolvable:$true] %s431_s22 }
  0x19   : > { %s433_s23 = scalar_lea.hbm %s432_s22, 8  ;;  %p438_p0 = scmp.lt.s32.totalorder %s432_s22, %s623_s5 }
  0x1a   : > { %248 = vmatpush.msra.mxu0 %v221_v3  ;;  %p434_p11 = scmp.ne.s32.totalorder %s432_s22, %s433_s23  ;;  %p439_p1 = scmp.lt.s32.totalorder %s437_s30, %s433_s23 }
  0x1b   : > { %368 = vmatmul.msk.f32.vlgmr.msra.gmra.mxu0 %vm229_vm0, %v220_v4 }
  0x1c   : > { %p435_p12 = pnand %p434_p11, %p550_p5  ;;  %p440_p2 = por %p439_p1, %p438_p0 }
  0x1e   : > { %p436_p13 = pneg %p435_p12 }
  0x20   : > { %p441_p3 = pnand %p440_p2, %p436_p13 }
  0x98   : > { %v250_v7 = vpop.f32.mrf.mxu0 }
  0x99   : > { %v251_v8 = vadd.f32 %v415_v6, %v250_v7 }
  0x9b   : > { %vm253_vm2 = vcmp.gt.f32.partialorder %v251_v8, 0.0 }
  0x9c   : > { %v369_v10 = vsel %vm253_vm2, 1.0, %v481_v9 }
  0x9d   : > { %370 = vmatmul.msk.f32.vlgmr.msra.gmra.mxu1 %vm261_vm1, %v369_v10 }
 0x11a   : > { %v282_v12 = vpop.f32.mrf.mxu1 }
 0x11b   : > { %v283_v13 = vadd.f32 %v416_v11, %v282_v12 }
 0x11d   : > { %286 = vst.msk [vmem:[%s215_s14] sm:$0xff] %vm285_vm3, %v283_v13 }
 0x11e   : > { %444 = shalt.err (!%p441_p3)
}
 0x11f   : > { %375 = dma.vmem_to_hbm [thread:$0]  (%p550_p5), %s301_s15, 128, %s303_s16, %s288_s17  }
 0x120 PF: > { %p381_p4 = scmp.ge.s32.totalorder %s479_s21, 2  ;;  %s314_s6 = sand.u32 1, %s467_s18  }
 0x121   : > { %s315_s9 = scalar_lea.sflag [#allocation3], %s314_s6 }
 0x122   : > { %p378_p7 = pnand %p381_p4, %p554_p6 }
 0x124   : > { %p379_p8 = pneg %p378_p7 }
 0x126   : > { %462 = dma.done.wait (%p379_p8), %s315_s9, 128  }
 0x127   : > { %464 = vsyncadd (%p379_p8), %s315_s9, 4294967168  ;;  %p15_p9 = scmp.ge.s32.totalorder %s537_s24, 4   ;;  %s626_s18 = smov %s471_s19 }
 0x128   : > { %s627_s19 = smov %s475_s20  ;;  %s628_s20 = smov %s548_s27 }
 0x129   : > { %s629_s21 = smov %s537_s24  ;;  %17 = sbr.rel (!%p15_p9) target bundleno = 3 (0x3), region = 75 }
 0x12e   :  { %321 = vsyncpa [#allocation3], 1 }
 0x12f   :  { %323 = vsyncpa [#allocation3 + $0x1], 1 }

</bundles_post_ra>
